<compile_context>
chip_gen: v5e
topology: v5e:2x2
jax: 0.10.0
libtpu: 0.0.40
codegen_flags: <defaults>
</compile_context>

<pallas_src>
import functools

import jax
import jax.numpy as jnp
from jax import lax
from jax.experimental import pallas as pl
from jax.experimental.pallas import tpu as pltpu

PAD = 4  # RandomShiftsAug pad used in patchAIL / DrQ-v2


def _round_up(x, m):
    return -(-x // m) * m


def _custom_aug_kernel(shifts_ref, x_ref, o_ref, rowpad_ref,
                       *, H, W, pad, TOP, TB, B):
    """One grid step = TB batch items of one 3-channel frame.

    shifts_ref : SMEM int32 [num_frames * B * 2]   (sy, sx) per (frame, item)
    x_ref      : VMEM [TB, 3, H, W]       source frame block (native dtype)
    o_ref      : VMEM f32 [TB, 3, H, W]   augmented frame block
    rowpad_ref : VMEM f32 [TB, 3, TOP + H + pad, W]  row-padded scratch
                 (rows [TOP, TOP+H) = column-shifted interior, sublane-aligned)
    """
    bb = pl.program_id(0)            # batch-tile index (leading / megacore axis)
    f = pl.program_id(1)             # frame index
    base = (f * B + bb * TB) * 2     # flat offset of this block's shifts

    # Hoisted iotas for the one-hot column-selection matrix (built once).
    out_x = lax.broadcasted_iota(jnp.int32, (W, W), 1)   # output column index
    src_w = lax.broadcasted_iota(jnp.int32, (W, W), 0)   # source column index

    def per_item(tb, carry):
        sy = shifts_ref[base + 2 * tb]
        sx = shifts_ref[base + 2 * tb + 1]

        # -- 1. One-hot column selection with clamping (== replicate pad) --
        #    csel[w, x] = 1  iff  w == clamp(x + sx - pad, 0, W-1)
        sel = jnp.clip(out_x + (sx - pad), 0, W - 1)
        csel = (src_w == sel).astype(jnp.float32)            # (W, W)

        # -- 2. Column shift on the MXU, into the aligned scratch interior --
        #    (exact for pixel-valued inputs: products are 1.0*x or 0.0*x)
        for ch in range(3):                                  # static unroll
            xc = x_ref[tb, ch].astype(jnp.float32)           # (H, W)
            rowpad_ref[tb, ch, TOP:TOP + H, :] = jnp.dot(
                xc, csel, preferred_element_type=jnp.float32)

        # -- 3. Replicate top / bottom edge rows (<= pad rows each, cheap) --
        top = rowpad_ref[tb, :, TOP:TOP + 1, :]
        bot = rowpad_ref[tb, :, TOP + H - 1:TOP + H, :]
        rowpad_ref[tb, :, TOP - pad:TOP, :] = jnp.broadcast_to(
            top, (3, pad, W))
        rowpad_ref[tb, :, TOP + H:TOP + H + pad, :] = jnp.broadcast_to(
            bot, (3, pad, W))

        # -- 4. Row crop: dynamic sublane slice straight into the output --
        start = sy + (TOP - pad)        # padded-image row sy -> scratch row
        o_ref[tb] = rowpad_ref[tb, :, pl.ds(start, H), :].astype(o_ref.dtype)
        return carry

    lax.fori_loop(0, TB, per_item, 0)


def _tile_bytes(rows, cols, itemsize):
    """VMEM footprint of one [rows, cols] slab in (sublane, 128)-tiled layout."""
    sublane = 8 * max(1, 4 // itemsize)   # 8 (32-bit), 16 (16-bit), 32 (8-bit)
    return _round_up(rows, sublane) * _round_up(cols, 128) * itemsize


def _plan_batch_tile(B, target_tb):
    """Pick (TB, B_padded): largest divisor of B <= target, else pad B a bit."""
    target_tb = max(1, int(target_tb))
    d = max(t for t in range(1, min(B, target_tb) + 1) if B % t == 0)
    if d == B or d >= max(8, target_tb // 2):
        return d, B
    # Awkward batch (e.g. prime B): pad to a multiple of 8 and retry rather
    # than collapsing to TB=1 (per-step-overhead cliff).
    b_pad = _round_up(B, 8)
    d = max(t for t in range(1, min(b_pad, target_tb) + 1) if b_pad % t == 0)
    return d, b_pad


def custom_aug(obs, key, pad=PAD, target_tb=32):
    """JAX/Pallas equivalent of CustomAug(RandomShiftsAug(pad)).forward(obs).

    `obs` may be uint8 / bf16 / f32; the float32 cast is fused in-kernel.
    Returns (augmented float32 [B, 3*num_frames, H, W],
             shifts    int32   [num_frames, B, 2]).

    target_tb: batch items per grid step.  32 (default) keeps the working set
    ~<30 MiB, comfortable on every generation incl. v7x's 64 MiB VMEM; 64 is
    fine on v5e/v6e (128 MiB) for 84x84 frames.
    """
    B, C, H, W = obs.shape
    assert H == W, "CustomAug requires square images"
    num_frames = C // 3
    assert num_frames >= 1, "need at least 3 channels"
    C_out = 3 * num_frames              # torch drops channels past 3*num_frames

    TB, B_pad = _plan_batch_tile(B, target_tb)
    if B_pad != B:
        obs = jnp.pad(obs, ((0, B_pad - B), (0, 0), (0, 0), (0, 0)))
    nb = B_pad // TB

    # RandomShiftsAug: independent integer shift per (frame, batch) element;
    # randint range [0, 2*pad] matches torch.randint(0, 2*pad + 1).
    shifts = jax.random.randint(
        key, (num_frames, B_pad, 2), 0, 2 * pad + 1, dtype=jnp.int32)

    TOP = _round_up(pad, 8)             # sublane-aligned top padding rows

    # VMEM budget from the actual buffers: 2x double-buffered in/out blocks
    # plus the row-padded scratch, including (sublane, 128)-tile padding.
    in_bytes = TB * 3 * _tile_bytes(H, W, obs.dtype.itemsize)
    out_bytes = TB * 3 * _tile_bytes(H, W, 4)
    rowpad_bytes = TB * 3 * _tile_bytes(TOP + H + pad, W, 4)
    vmem_limit = int(1.25 * (2 * in_bytes + 2 * out_bytes + rowpad_bytes))
    vmem_limit = max(8 << 20, min(vmem_limit + (2 << 20), 100 << 20))

    kernel = functools.partial(
        _custom_aug_kernel, H=H, W=W, pad=pad, TOP=TOP, TB=TB, B=B_pad)

    out = pl.pallas_call(
        kernel,
        out_shape=jax.ShapeDtypeStruct((B_pad, C_out, H, W), jnp.float32),
        grid_spec=pltpu.PrefetchScalarGridSpec(
            num_scalar_prefetch=1,
            grid=(nb, num_frames),      # batch axis leads -> megacore splits it
            in_specs=[
                pl.BlockSpec((TB, 3, H, W), lambda bb, f, s: (bb, f, 0, 0)),
            ],
            out_specs=pl.BlockSpec((TB, 3, H, W), lambda bb, f, s: (bb, f, 0, 0)),
            scratch_shapes=[
                pltpu.VMEM((TB, 3, TOP + H + pad, W), jnp.float32),
            ],
        ),
        compiler_params=pltpu.CompilerParams(
            dimension_semantics=("parallel", "parallel"),
            vmem_limit_bytes=vmem_limit,
        ),
    )(shifts.reshape(-1), obs)

    if B_pad != B:
        out = out[:B]
        shifts = shifts[:, :B]
    return out, shifts


def _reference(obs, shifts, pad=PAD):
    """Pure-JAX reference of the same computation (sanity check)."""
    B, C, H, W = obs.shape
    num_frames = C // 3
    padded = jnp.pad(
        obs.astype(jnp.float32),
        ((0, 0), (0, 0), (pad, pad), (pad, pad)),
        mode="edge",
    )
    frames = []
    for f in range(num_frames):
        per_b = []
        for b in range(B):
            sy, sx = shifts[f, b, 0], shifts[f, b, 1]
            crop = lax.dynamic_slice(
                padded[b, 3 * f:3 * f + 3], (0, sy, sx), (3, H, W))
            per_b.append(crop)
        frames.append(jnp.stack(per_b, axis=0))
    return jnp.concatenate(frames, axis=1)


if __name__ == "__main__":
    key = jax.random.PRNGKey(0)
    k_obs, k_shift = jax.random.split(key)

    # Small shapes: batch=2, 3 stacked RGB frames (C=9), 16x16 spatial.
    B, C, H, W = 2, 9, 16, 16
    # Integer-valued pixels (what patchAIL feeds: uint8 frames); the one-hot
    # selection matmul is then exact under any MXU precision path.
    obs = jnp.round(
        jax.random.uniform(k_obs, (B, C, H, W), jnp.float32) * 255.0)

    out, shifts = custom_aug(obs, k_shift)
    out = jax.block_until_ready(out)

    ref = _reference(obs, shifts)
    assert out.shape == (B, C, H, W)
    assert out.dtype == jnp.float32
    assert jnp.allclose(out, ref, atol=1e-3), "Pallas output mismatch vs reference"

    print("KERNEL_OK")
</pallas_src>

<mosaic_0001>
module attributes {stable_mosaic.version = 11 : i64} {
  func.func @_custom_aug_kernel(%arg0: i32, %arg1: i32, %arg2: memref<12xi32, #tpu.memory_space<smem>>, %arg3: memref<2x3x16x16xf32, #tpu.memory_space<vmem>>, %arg4: memref<2x3x16x16xf32, #tpu.memory_space<vmem>>, %arg5: memref<2x3x28x16xf32, #tpu.memory_space<vmem>>) attributes {dimension_semantics = [#tpu.dimension_semantics<parallel>, #tpu.dimension_semantics<parallel>], iteration_bounds = array<i64: 1, 3>, scalar_prefetch = 1 : i64, scratch_operands = 1 : i64, tpu.core_type = #tpu.core_type<tc>, window_params = [{transform_indices = @transform_0, window_bounds = array<i64: 2, 3, 16, 16>}, {transform_indices = @transform_1, window_bounds = array<i64: 2, 3, 16, 16>}]} {
    %c2_i32 = arith.constant 2 : i32
    %0 = arith.muli %arg1, %c2_i32 : i32
    %c2_i32_0 = arith.constant 2 : i32
    %1 = arith.muli %arg0, %c2_i32_0 : i32
    %2 = arith.addi %0, %1 : i32
    %c2_i32_1 = arith.constant 2 : i32
    %3 = arith.muli %2, %c2_i32_1 : i32
    %4 = tpu.iota {dimensions = array<i32: 1>} : vector<16x16xi32>
    %5 = tpu.iota {dimensions = array<i32: 0>} : vector<16x16xi32>
    %c0_i32 = arith.constant 0 : i32
    %c2_i32_2 = arith.constant 2 : i32
    %6 = arith.addi %c0_i32, %c2_i32_2 : i32
    %c1_i32 = arith.constant 1 : i32
    scf.for %arg6 = %c0_i32 to %6 step %c1_i32  : i32 {
      %c2_i32_4 = arith.constant 2 : i32
      %7 = arith.muli %c2_i32_4, %arg6 : i32
      %8 = arith.addi %3, %7 : i32
      %9 = arith.index_cast %8 : i32 to index
      %10 = memref.load %arg2[%9] : memref<12xi32, #tpu.memory_space<smem>>
      %c2_i32_5 = arith.constant 2 : i32
      %11 = arith.muli %c2_i32_5, %arg6 : i32
      %12 = arith.addi %3, %11 : i32
      %c1_i32_6 = arith.constant 1 : i32
      %13 = arith.addi %12, %c1_i32_6 : i32
      %14 = arith.index_cast %13 : i32 to index
      %15 = memref.load %arg2[%14] : memref<12xi32, #tpu.memory_space<smem>>
      %c4_i32 = arith.constant 4 : i32
      %16 = arith.subi %15, %c4_i32 : i32
      %17 = vector.broadcast %16 : i32 to vector<16x16xi32>
      %18 = arith.addi %4, %17 : vector<16x16xi32>
      %c0_i32_7 = arith.constant 0 : i32
      %c15_i32 = arith.constant 15 : i32
      %19 = vector.broadcast %c0_i32_7 : i32 to vector<16x16xi32>
      %20 = arith.maxsi %19, %18 : vector<16x16xi32>
      %21 = vector.broadcast %c15_i32 : i32 to vector<16x16xi32>
      %22 = arith.minsi %21, %20 : vector<16x16xi32>
      %23 = arith.cmpi eq, %5, %22 : vector<16x16xi32>
      %24 = arith.extui %23 : vector<16x16xi1> to vector<16x16xi32>
      %25 = arith.sitofp %24 : vector<16x16xi32> to vector<16x16xf32>
      %26 = arith.index_cast %arg6 : i32 to index
      %c0 = arith.constant 0 : index
      %c0_8 = arith.constant 0 : index
      %c0_9 = arith.constant 0 : index
      %27 = vector.load %arg3[%26, %c0, %c0_8, %c0_9] : memref<2x3x16x16xf32, #tpu.memory_space<vmem>>, vector<1x1x16x16xf32>
      %28 = vector.shape_cast %27 : vector<1x1x16x16xf32> to vector<16x16xf32>
      %cst = arith.constant dense<0.000000e+00> : vector<16x16xf32>
      %29 = tpu.matmul %28, %25, %cst {dimension_numbers = #tpu.dot_dimension_numbers<[1], [0], [0], [1], [0, 0, 1, 1], [], []>} : vector<16x16xf32>, vector<16x16xf32>, vector<16x16xf32> -> vector<16x16xf32>
      %30 = arith.index_cast %arg6 : i32 to index
      %c0_10 = arith.constant 0 : index
      %c8 = arith.constant 8 : index
      %c0_11 = arith.constant 0 : index
      %31 = vector.load %arg5[%30, %c0_10, %c8, %c0_11] : memref<2x3x28x16xf32, #tpu.memory_space<vmem>>, vector<1x1x16x16xf32>
      %32 = vector.shape_cast %31 : vector<1x1x16x16xf32> to vector<16x16xf32>
      %33 = vector.shape_cast %29 : vector<16x16xf32> to vector<1x1x16x16xf32>
      tpu.vector_store %arg5[%30, %c0_10, %c8, %c0_11], %33 {strides = array<i32>} : memref<2x3x28x16xf32, #tpu.memory_space<vmem>>, vector<1x1x16x16xf32>,
      %34 = arith.index_cast %arg6 : i32 to index
      %c1 = arith.constant 1 : index
      %c0_12 = arith.constant 0 : index
      %c0_13 = arith.constant 0 : index
      %35 = vector.load %arg3[%34, %c1, %c0_12, %c0_13] : memref<2x3x16x16xf32, #tpu.memory_space<vmem>>, vector<1x1x16x16xf32>
      %36 = vector.shape_cast %35 : vector<1x1x16x16xf32> to vector<16x16xf32>
      %cst_14 = arith.constant dense<0.000000e+00> : vector<16x16xf32>
      %37 = tpu.matmul %36, %25, %cst_14 {dimension_numbers = #tpu.dot_dimension_numbers<[1], [0], [0], [1], [0, 0, 1, 1], [], []>} : vector<16x16xf32>, vector<16x16xf32>, vector<16x16xf32> -> vector<16x16xf32>
      %38 = arith.index_cast %arg6 : i32 to index
      %c1_15 = arith.constant 1 : index
      %c8_16 = arith.constant 8 : index
      %c0_17 = arith.constant 0 : index
      %39 = vector.load %arg5[%38, %c1_15, %c8_16, %c0_17] : memref<2x3x28x16xf32, #tpu.memory_space<vmem>>, vector<1x1x16x16xf32>
      %40 = vector.shape_cast %39 : vector<1x1x16x16xf32> to vector<16x16xf32>
      %41 = vector.shape_cast %37 : vector<16x16xf32> to vector<1x1x16x16xf32>
      tpu.vector_store %arg5[%38, %c1_15, %c8_16, %c0_17], %41 {strides = array<i32>} : memref<2x3x28x16xf32, #tpu.memory_space<vmem>>, vector<1x1x16x16xf32>,
      %42 = arith.index_cast %arg6 : i32 to index
      %c2 = arith.constant 2 : index
      %c0_18 = arith.constant 0 : index
      %c0_19 = arith.constant 0 : index
      %43 = vector.load %arg3[%42, %c2, %c0_18, %c0_19] : memref<2x3x16x16xf32, #tpu.memory_space<vmem>>, vector<1x1x16x16xf32>
      %44 = vector.shape_cast %43 : vector<1x1x16x16xf32> to vector<16x16xf32>
      %cst_20 = arith.constant dense<0.000000e+00> : vector<16x16xf32>
      %45 = tpu.matmul %44, %25, %cst_20 {dimension_numbers = #tpu.dot_dimension_numbers<[1], [0], [0], [1], [0, 0, 1, 1], [], []>} : vector<16x16xf32>, vector<16x16xf32>, vector<16x16xf32> -> vector<16x16xf32>
      %46 = arith.index_cast %arg6 : i32 to index
      %c2_21 = arith.constant 2 : index
      %c8_22 = arith.constant 8 : index
      %c0_23 = arith.constant 0 : index
      %47 = vector.load %arg5[%46, %c2_21, %c8_22, %c0_23] : memref<2x3x28x16xf32, #tpu.memory_space<vmem>>, vector<1x1x16x16xf32>
      %48 = vector.shape_cast %47 : vector<1x1x16x16xf32> to vector<16x16xf32>
      %49 = vector.shape_cast %45 : vector<16x16xf32> to vector<1x1x16x16xf32>
      tpu.vector_store %arg5[%46, %c2_21, %c8_22, %c0_23], %49 {strides = array<i32>} : memref<2x3x28x16xf32, #tpu.memory_space<vmem>>, vector<1x1x16x16xf32>,
      %50 = arith.index_cast %arg6 : i32 to index
      %c0_24 = arith.constant 0 : index
      %c8_25 = arith.constant 8 : index
      %c0_26 = arith.constant 0 : index
      %51 = vector.load %arg5[%50, %c0_24, %c8_25, %c0_26] : memref<2x3x28x16xf32, #tpu.memory_space<vmem>>, vector<1x3x1x16xf32>
      %52 = vector.shape_cast %51 : vector<1x3x1x16xf32> to vector<3x1x16xf32>
      %53 = arith.index_cast %arg6 : i32 to index
      %c0_27 = arith.constant 0 : index
      %c23 = arith.constant 23 : index
      %c0_28 = arith.constant 0 : index
      %54 = vector.load %arg5[%53, %c0_27, %c23, %c0_28] : memref<2x3x28x16xf32, #tpu.memory_space<vmem>>, vector<1x3x1x16xf32>
      %55 = vector.shape_cast %54 : vector<1x3x1x16xf32> to vector<3x1x16xf32>
      %56 = vector.shape_cast %52 : vector<3x1x16xf32> to vector<3x1x16xf32>
      %57 = vector.broadcast %56 : vector<3x1x16xf32> to vector<3x4x16xf32>
      %58 = arith.index_cast %arg6 : i32 to index
      %c0_29 = arith.constant 0 : index
      %c4 = arith.constant 4 : index
      %c0_30 = arith.constant 0 : index
      %59 = vector.load %arg5[%58, %c0_29, %c4, %c0_30] : memref<2x3x28x16xf32, #tpu.memory_space<vmem>>, vector<1x3x4x16xf32>
      %60 = vector.shape_cast %59 : vector<1x3x4x16xf32> to vector<3x4x16xf32>
      %61 = vector.shape_cast %57 : vector<3x4x16xf32> to vector<1x3x4x16xf32>
      tpu.vector_store %arg5[%58, %c0_29, %c4, %c0_30], %61 {strides = array<i32>} : memref<2x3x28x16xf32, #tpu.memory_space<vmem>>, vector<1x3x4x16xf32>,
      %62 = vector.shape_cast %55 : vector<3x1x16xf32> to vector<3x1x16xf32>
      %63 = vector.broadcast %62 : vector<3x1x16xf32> to vector<3x4x16xf32>
      %64 = arith.index_cast %arg6 : i32 to index
      %c0_31 = arith.constant 0 : index
      %c24 = arith.constant 24 : index
      %c0_32 = arith.constant 0 : index
      %65 = vector.load %arg5[%64, %c0_31, %c24, %c0_32] : memref<2x3x28x16xf32, #tpu.memory_space<vmem>>, vector<1x3x4x16xf32>
      %66 = vector.shape_cast %65 : vector<1x3x4x16xf32> to vector<3x4x16xf32>
      %67 = vector.shape_cast %63 : vector<3x4x16xf32> to vector<1x3x4x16xf32>
      tpu.vector_store %arg5[%64, %c0_31, %c24, %c0_32], %67 {strides = array<i32>} : memref<2x3x28x16xf32, #tpu.memory_space<vmem>>, vector<1x3x4x16xf32>,
      %c4_i32_33 = arith.constant 4 : i32
      %68 = arith.addi %10, %c4_i32_33 : i32
      %69 = arith.index_cast %arg6 : i32 to index
      %c0_34 = arith.constant 0 : index
      %70 = arith.index_cast %68 : i32 to index
      %c0_35 = arith.constant 0 : index
      %71 = vector.load %arg5[%69, %c0_34, %70, %c0_35] : memref<2x3x28x16xf32, #tpu.memory_space<vmem>>, vector<1x3x16x16xf32>
      %72 = vector.shape_cast %71 : vector<1x3x16x16xf32> to vector<3x16x16xf32>
      %73 = arith.index_cast %arg6 : i32 to index
      %c0_36 = arith.constant 0 : index
      %c0_37 = arith.constant 0 : index
      %c0_38 = arith.constant 0 : index
      %74 = vector.load %arg4[%73, %c0_36, %c0_37, %c0_38] : memref<2x3x16x16xf32, #tpu.memory_space<vmem>>, vector<1x3x16x16xf32>
      %75 = vector.shape_cast %74 : vector<1x3x16x16xf32> to vector<3x16x16xf32>
      %76 = vector.shape_cast %72 : vector<3x16x16xf32> to vector<1x3x16x16xf32>
      tpu.vector_store %arg4[%73, %c0_36, %c0_37, %c0_38], %76 {strides = array<i32>} : memref<2x3x16x16xf32, #tpu.memory_space<vmem>>, vector<1x3x16x16xf32>,
    }
    %c2_i32_3 = arith.constant 2 : i32
    return
  }
  func.func @transform_0(%arg0: i32, %arg1: i32, %arg2: memref<12xi32, #tpu.memory_space<smem>>) -> (i32, i32, i32, i32) {
    %c0_i32 = arith.constant 0 : i32
    %c0_i32_0 = arith.constant 0 : i32
    %c0_i32_1 = arith.constant 0 : i32
    return %arg0, %arg1, %c0_i32, %c0_i32_0 : i32, i32, i32, i32
  }
  func.func @transform_1(%arg0: i32, %arg1: i32, %arg2: memref<12xi32, #tpu.memory_space<smem>>) -> (i32, i32, i32, i32) {
    %c0_i32 = arith.constant 0 : i32
    %c0_i32_0 = arith.constant 0 : i32
    %c0_i32_1 = arith.constant 0 : i32
    return %arg0, %arg1, %c0_i32, %c0_i32_0 : i32, i32, i32, i32
  }
}

</mosaic_0001>

<bundles_post_ra>
// kernel: tpu_custom_call.1
= control target key start
LH: loop header
LB: loop body
LE: loop exit
PB: predicated region body
PF: predicated region fallthrough
CT: control target
= control target key end

     0   :  { %s765_s12 = smov [#allocation4]   ;;  %s1008_s0 = inlined_call_operand.hbm [shape: s32[12], index: 0, kind: input, shape index: {}]   ;;  %s1009_s1 = inlined_call_operand.hbm [shape: f32[2,9,16,16], index: 1, kind: input, shape index: {}]   ;;  %s1010_s2 = inlined_call_operand.hbm [shape: f32[2,9,16,16], index: 2, kind: output, shape index: {}]  }
   0x1   :  { %s8_s11 = sshll.u32 %s1008_s0, 4  ;;  %s9_s11 = int_to_ptr.hbm [resolvable:$true] %s8_s11 }
   0x2   :  { %11 = dma.hbm_to_smem %s9_s11, 16, %s765_s12, [#allocation3] }
   0x3   :  { %727 = dma.done.wait [#allocation3], 16 }
   0x4   :  { %728 = vsyncadd [#allocation3], 4294967280 }
   0x5   :  { %14 = sfence }
   0x6   :  { %15 = vsyncpa [#allocation6], 0 }
   0x7   :  { %17 = vsyncpa [#allocation6 + $0x1], 0 }
   0x8   :  { %18 = vsyncpa [#allocation7], 0 }
   0x9   :  { %20 = vsyncpa [#allocation7 + $0x1], 0  ;;  %s798_s13 = smov 0   ;;  %s800_s14 = smov 0  }
   0xa   :  { %s802_s15 = smov 0   ;;  %s804_s16 = smov 0  }
   0xb   :  { %s806_s17 = smov 0   ;;  %s808_s0 = smov 0  }
   0xc LB: > { %s532_s18 = sadd.s32 4294967295, %s759_s0   ;;  %s533_s19 = sadd.s32 4294967294, %s759_s0   ;;  %s759_s0 = sphi %s808_s0, %s26_s0   ;;  %s755_s17 = sphi %s806_s17, %s1019_s17   ;;  %s751_s16 = sphi %s804_s16, %s1018_s16   ;;  %s747_s15 = sphi %s802_s15, %s1017_s15   ;;  %s743_s14 = sphi %s800_s14, %s1016_s14   ;;  %s739_s13 = sphi %s798_s13, %s1015_s13  }
   0xd   : > { %s35_s20 = sadd.s32 1, %s755_s17  ;;  %s47_s21 = sadd.s32 1, %s747_s15 }
   0xe   : > { %p36_p0 = scmp.ge.s32.totalorder %s35_s20, 3  ;;  %p54_p1 = scmp.ne.s32.totalorder %s747_s15, %s743_s14 }
   0xf   : > { %p55_p2 = scmp.eq.s32.totalorder %s759_s0, 0  ;;  %p60_p3 = scmp.ne.s32.totalorder %s743_s14, %s739_s13 }
  0x10   : > { %s1021_s20 = smov (%p36_p0, %s35_s20), 0  ;;  %p61_p5 = scmp.eq.s32.totalorder %s532_s18, 0 }
  0x11   : > { %p839_p4 = por %p55_p2, %p54_p1  ;;  %s43_s23 = ssub.s32 %s755_s17, %s1021_s20 }
  0x12   : > { %p86_p6 = scmp.eq.s32.totalorder %s532_s18, 2  ;;  %p45_p7 = scmp.eq.s32.totalorder %s43_s23, 0 }
  0x13   : > { %p845_p8 = por %p61_p5, %p60_p3  ;;  %p92_p10 = scmp.eq.s32.totalorder %s533_s19, 2 }
  0x14   : > { %p849_p9 = por %p86_p6, %p54_p1  ;;  %p535_p12 = scmp.ge.s32.totalorder %s759_s0, 3 }
  0x15   : > { %s854_s26 = scalar_select %p45_p7, %s747_s15, %s47_s21  }
  0x16   : > { %p856_p11 = por %p92_p10, %p60_p3  ;;  %108 = sbr.rel (%p535_p12) target bundleno = 42 (0x2a), region = 16 }
  0x1b   : > { %s112_s28 = sand.u32 1, %s747_s15   ;;  %s582_s29 = smul.u32 48, %s755_s17 }
  0x1c   : > { %s586_s30 = smul.u32 96, %s112_s28  ;;  %s766_s11 = smov 2304  }
  0x1d   : > { %s125_s5 = scalar_lea.hbm %s1009_s1, %s582_s29  ;;  %589 = sst [smem:[#allocation10]] (%p839_p4), %s766_s11 }
  0x1e   : > { %s138_s6 = sshll.u32 %s125_s5, 4  ;;  %s116_s8 = scalar_lea.vmem [#allocation5], %s586_s30  ;;  %s139_s6 = int_to_ptr.hbm [resolvable:$true] %s138_s6 }
  0x1f   : > { %s588_s7 = scalar_select %p839_p4, [#allocation0], [#allocation13] }
  0x20   : > { %s140_s9 = sshll.u32 %s116_s8, 4  ;;  %s767_s12 = smov 768   ;;  %s141_s9 = int_to_ptr.vmem [resolvable:$true] %s140_s9 }
  0x21   : > { %s130_s10 = sld [smem:[%s588_s7]]   ;;  %s768_s18 = smov 6  }
  0x22   : > { %590 = sst [smem:[#allocation10 + $0x1]] (%p839_p4), %s767_s12  ;;  %s769_s19 = smov 128  }
  0x23   : > { %591 = sst [smem:[#allocation10 + $0x2]] (%p839_p4), %s768_s18  ;;  %s770_s23 = smov 8  }
  0x24   : > { %592 = sst [smem:[#allocation10 + $0x3]] (%p839_p4), %s769_s19  ;;  %s113_s30 = scalar_lea.sflag [#allocation6], %s112_s28 }
  0x25   : > { %593 = sst [smem:[#allocation10 + $0x4]] (%p839_p4), %s769_s19  ;;  %s771_s3 = smov [#allocation9]  }
  0x26   : > { %594 = sst [smem:[#allocation10 + $0x5]] (%p839_p4), %s770_s23 }
  0x27   : > { %s538_s21 = sshll.u32 %s130_s10, 26 }
  0x28   : > { %s539_s29 = sadd.s32 134217728, %s538_s21 }
  0x29   : > { %595 = dma.general (%p839_p4), %s139_s6, 1536, %s141_s9, %s113_s30, %s771_s3, [#allocation10], %s539_s29, 0  }
  0x2a PF: > { %p540_p13 = scmp.ge.s32.totalorder %s759_s0, 1  ;;  %p161_p0 = scmp.lt.s32.totalorder %s759_s0, 4 }
  0x2c   : > { %p162_p1 = pnand %p540_p13, %p161_p0 }
  0x2d   : > { %s885_s4 = sand.u32 (!%p162_p1), 1, %s743_s14  }
  0x2e   : > { %165 = sbr.rel (%p162_p1) target bundleno = 250 (0xfa), region = 24  ;;  %s168_s7 = scalar_lea.sflag (!%p162_p1), [#allocation6], %s885_s4 }
  0x2f   : > { %s587_s5 = smul.u32 (!%p162_p1), 96, %s885_s4 }
  0x31   : > { %s889_s8 = scalar_lea.vmem (!%p162_p1), [#allocation5], %s587_s5 }
  0x33   : > { %730 = dma.done.wait (%p845_p8), %s168_s7, 1536  }
  0x34   : > { %732 = vsyncadd (%p845_p8), %s168_s7, 4294965760  ;;  %s579_s22 = sshll.u32 %s751_s16, 2  ;;  %v199_v0 = vlaneseq  ;;  %s903_s28 = scalar_lea.vmem [#allocation8], %s587_s5 }
  0x35   : > { %s905_s6 = smov 0  }
  0x36   : > { %v896_v1 = vand.u32 127, %v199_v0  ;;  %v898_v2 = vshrl.u32 %v199_v0, 7 }
  0x38   : > { %v901_v3 = vadd.s32 8, %v898_v2 }
  0x39 LB: >> { %s543_s24 = sshll.u32 %s763_s6, 1  ;;  %s262_s18 = smul.u32 96, %s763_s6  ;;  %v772_v8 = vmov 1.0   ;;  %vm232_vm4 = vcmask 130048   ;;  %vm349_vm5 = vcmask 125952   ;;  %s763_s6 = sphi %s905_s6, %s209_s6  }
  0x3a   : >> { %s211_s9 = sadd.s32 %s579_s22, %s543_s24  ;;  %s228_s23 = smul.u32 48, %s763_s6 }
  0x3b   : >> { %s212_s10 = sld [smem:[#allocation4 + %s211_s9]]  ;;  %s213_s11 = sadd.s32 1, %s211_s9 }
  0x3c   : >> { %s214_s12 = sld [smem:[#allocation4 + %s213_s11]]  ;;  %s229_s29 = scalar_lea.vmem %s889_s8, %s228_s23 [#allocation5] }
  0x3d   : >> { %v559_v9 = vld [vmem:[%s229_s29 + $0x20] sm:$0xff]  ;;  %v551_v10 = vld [vmem:[%s229_s29 + $0x10] sm:$0xff]  ;;  %v231_v11 = vld [vmem:[%s229_s29 + $0x8] sm:$0xff]  ;;  %s263_s30 = scalar_lea.vmem [#allocation2], %s262_s18  ;;  %s368_s3 = scalar_lea.vmem %s903_s28, %s228_s23 [#allocation8] }
  0x3e   : >> { %v230_v12 = vld [vmem:[%s229_s29] sm:$0xff]  ;;  %v560_v13 = vld [vmem:[%s229_s29 + $0x28] sm:$0xff]  ;;  %v552_v14 = vld [vmem:[%s229_s29 + $0x18] sm:$0xff]  ;;  %s209_s6 = sadd.s32 1, %s763_s6  }
  0x3f   : >> { %p206_p2 = scmp.ge.s32.totalorder %s209_s6, 2  }
  0x40   : > { %s376_s7 = scalar_lea.sflag (%p206_p2), [#allocation7], %s885_s4 }
  0x41   : >> { %s916_s19 = sadd.s32 %s262_s18, %s212_s10 }
  0x42   : >> { %s544_s21 = sadd.s32 4294967292, %s214_s12  ;;  %s480_s5 = scalar_lea.vmem [#allocation2], %s916_s19 }
  0x43   : >> { %v216_v4 = vstv %s544_s21 }
  0x44   : >> { %v217_v5 = vadd.s32 %v216_v4, %v896_v1 }
  0x46   : >> { %vm218_vm0 = vcmp.gt.s32.totalorder %v217_v5, 0 }
  0x47   : >> { %v219_v6 = vsel %vm218_vm0, %v217_v5, 0 }
  0x48   : >> { %vm220_vm1 = vcmp.lt.s32.totalorder %v219_v6, 15 }
  0x49   : >> { %v221_v7 = vsel %vm220_vm1, %v219_v6, 15 }
  0x4a   : >> { %vm223_vm2 = vcmp.eq.s32.totalorder %v901_v3, %v221_v7  ;;  %vm222_vm3 = vcmp.eq.s32.totalorder %v898_v2, %v221_v7 }
  0x4b   : >> { %561 = vmatpush.msk.msra.mxu2 %vm223_vm2, %v772_v8  ;;  %553 = vmatpush.msk.msra.mxu1 %vm223_vm2, %v772_v8 }
  0x4c   : >> { %584 = vmatpush.msk.msra.mxu3 %vm223_vm2, %v772_v8  ;;  %547 = vmatpush.msk.msra.mxu0 %vm223_vm2, %v772_v8 }
  0x4d   : >> { %562 = vmatpush.msk.msra.mxu2 %vm222_vm3, %v772_v8  ;;  %554 = vmatpush.msk.msra.mxu1 %vm222_vm3, %v772_v8 }
  0x4e   : >> { %563 = vmatmul.msk.f32.vlgmr.msra.gmra.mxu2 %vm232_vm4, %v559_v9  ;;  %555 = vmatmul.msk.f32.vlgmr.msra.gmra.mxu1 %vm232_vm4, %v551_v10 }
  0x4f   : >> { %585 = vmatpush.msk.msra.mxu3 %vm222_vm3, %v772_v8  ;;  %548 = vmatpush.msk.msra.mxu0 %vm222_vm3, %v772_v8 }
  0x50   : >> { %550 = vmatmul.msk.f32.vlgmr.msra.gmra.mxu3 %vm232_vm4, %v231_v11  ;;  %549 = vmatmul.msk.f32.vlgmr.msra.gmra.mxu0 %vm232_vm4, %v230_v12 }
  0x56   : >> { %564 = vmatmul.msk.f32.gmra.mxu2 %vm232_vm4, %v560_v13  ;;  %556 = vmatmul.msk.f32.gmra.mxu1 %vm232_vm4, %v552_v14 }
  0xcb   : >> { %v293_v15 = vpop.f32.mrf.mxu1 }
  0xcc   : >> { %557 = vst.msk [vmem:[%s263_s30 + $0x28] sm:$0xff] %vm232_vm4, %v293_v15 }
  0xcd   : >> { %v256_v16 = vpop.f32.mrf.mxu0 }
  0xce   : >> { %264 = vst.msk [vmem:[%s263_s30 + $0x8] sm:$0xff] %vm232_vm4, %v256_v16 }
  0xd1   : >> { %v330_v17 = vpop.f32.mrf.mxu2 }
  0xd2   : >> { %565 = vst.msk [vmem:[%s263_s30 + $0x48] sm:$0xff] %vm232_vm4, %v330_v17 }
  0xd3   : >> { %v681_v18 = vld [vmem:[%s263_s30 + $0x28] ss:$0 sm:$0xff]  ;;  %v259_v19 = vpop.f32.mrf.mxu3  ;;  %v296_v20 = vpop.f32.mrf.mxu1 }
  0xd4   : >> { %265 = vst.msk [vmem:[%s263_s30 + $0x10] sm:$0xff] %vm232_vm4, %v259_v19 }
  0xd5   : >> { %351 = vst.msk [vmem:[%s263_s30 + $0x24] sm:$0xf] %vm349_vm5, %v681_v18  ;;  %v683_v21 = vld [vmem:[%s263_s30 + $0x8] ss:$0 sm:$0xff] }
  0xd6   : >> { %558 = vst.msk [vmem:[%s263_s30 + $0x30] sm:$0xff] %vm232_vm4, %v296_v20 }
  0xd7   : >> { %350 = vst.msk [vmem:[%s263_s30 + $0x4] sm:$0xf] %vm349_vm5, %v683_v21 }
  0xd9   : >> { %v682_v22 = vld [vmem:[%s263_s30 + $0x48] ss:$0 sm:$0xff]  ;;  %v333_v23 = vpop.f32.mrf.mxu2 }
  0xda   : >> { %566 = vst.msk [vmem:[%s263_s30 + $0x50] sm:$0xff] %vm232_vm4, %v333_v23 }
  0xdb   : >> { %352 = vst.msk [vmem:[%s263_s30 + $0x44] sm:$0xf] %vm349_vm5, %v682_v22  ;;  %v684_v24 = vld [vmem:[%s263_s30 + $0x17] ss:$0 sm:$0xff] }
  0xdc   : >> { %356 = vst.msk [vmem:[%s263_s30 + $0x18] sm:$0xf] %vm349_vm5, %v684_v24 }
  0xdd   : >> { %v685_v25 = vld [vmem:[%s263_s30 + $0x37] ss:$0 sm:$0xff] }
  0xde   : >> { %357 = vst.msk [vmem:[%s263_s30 + $0x38] sm:$0xf] %vm349_vm5, %v685_v25 }
  0xe1   : >> { %v686_v26 = vld [vmem:[%s263_s30 + $0x57] ss:$0 sm:$0xff] }
  0xe2   : >> { %358 = vst.msk [vmem:[%s263_s30 + $0x58] sm:$0xf] %vm349_vm5, %v686_v26 }
  0xe9   : >> { %v567_v27 = vld [vmem:[%s480_s5 + $0x4] sm:$0xff]  ;;  %v568_v28 = vld [vmem:[%s480_s5 + $0xc] sm:$0xff] }
  0xea   : >> { %v569_v29 = vld [vmem:[%s480_s5 + $0x24] sm:$0xff]  ;;  %v570_v30 = vld [vmem:[%s480_s5 + $0x2c] sm:$0xff]  ;;  %369 = vst.msk [vmem:[%s368_s3] sm:$0xff] %vm232_vm4, %v567_v27 }
  0xeb   : >> { %v571_v31 = vld [vmem:[%s480_s5 + $0x44] sm:$0xff]  ;;  %370 = vst.msk [vmem:[%s368_s3 + $0x8] sm:$0xff] %vm232_vm4, %v568_v28  ;;  %v572_v32 = vld [vmem:[%s480_s5 + $0x4c] sm:$0xff]  ;;  %208 = sbr.rel (!%p206_p2) target bundleno = 57 (0x39), region = 94 }
  0xec   : >> { %371 = vst.msk [vmem:[%s368_s3 + $0x10] sm:$0xff] %vm232_vm4, %v569_v29 }
  0xed   : >> { %372 = vst.msk [vmem:[%s368_s3 + $0x18] sm:$0xff] %vm232_vm4, %v570_v30 }
  0xee   : >> { %373 = vst.msk [vmem:[%s368_s3 + $0x20] sm:$0xff] %vm232_vm4, %v571_v31 }
  0xef   : >> { %374 = vst.msk [vmem:[%s368_s3 + $0x28] sm:$0xff] %vm232_vm4, %v572_v32 }
  0xf0   : > { %s583_s24 = smul.u32 48, %s751_s16  ;;  %s402_s9 = sshll.u32 %s903_s28, 4  ;;  %s403_s9 = int_to_ptr.vmem [resolvable:$true] %s402_s9 }
  0xf1   : > { %s773_s6 = smov 768   ;;  %s774_s8 = smov 2304  }
  0xf2   : > { %s391_s12 = scalar_lea.hbm %s1010_s2, %s583_s24  ;;  %597 = sst [smem:[#allocation12]] (%p849_p9), %s773_s6 }
  0xf3   : > { %s404_s4 = sshll.u32 %s391_s12, 4  ;;  %598 = sst [smem:[#allocation12 + $0x1]] (%p849_p9), %s774_s8  ;;  %s405_s4 = int_to_ptr.hbm [resolvable:$true] %s404_s4 }
  0xf4   : > { %s775_s22 = smov 6   ;;  %s776_s16 = smov 128  }
  0xf5   : > { %599 = sst [smem:[#allocation12 + $0x2]] (%p849_p9), %s775_s22  ;;  %s777_s28 = smov 8  }
  0xf6   : > { %600 = sst [smem:[#allocation12 + $0x3]] (%p849_p9), %s776_s16  ;;  %s778_s18 = smov [#allocation11]  }
  0xf7   : > { %601 = sst [smem:[#allocation12 + $0x4]] (%p849_p9), %s776_s16  ;;  %s779_s19 = smov 0  }
  0xf8   : > { %602 = sst [smem:[#allocation12 + $0x5]] (%p849_p9), %s777_s28 }
  0xf9   : > { %603 = dma.general (%p849_p9), %s403_s9, 1536, %s405_s4, %s376_s7, %s778_s18, [#allocation12], %s779_s19, 0  }
  0xfa PF: > { %p609_p3 = scmp.ge.s32.totalorder %s759_s0, 2  ;;  %s432_s21 = sand.u32 1, %s739_s13  }
  0xfb   : > { %s433_s23 = scalar_lea.sflag [#allocation7], %s432_s21 }
  0xfc   : > { %p606_p4 = pnand %p609_p3, %p856_p11 }
  0xfe   : > { %p607_p5 = pneg %p606_p4 }
 0x100   : > { %734 = dma.done.wait (%p607_p5), %s433_s23, 1536  }
 0x101   : > { %736 = vsyncadd (%p607_p5), %s433_s23, 4294965760  ;;  %s26_s0 = sadd.s32 1, %s759_s0   ;;  %s1015_s13 = smov %s743_s14 }
 0x102   : > { %p23_p6 = scmp.ge.s32.totalorder %s26_s0, 5   ;;  %s1016_s14 = smov %s747_s15 }
 0x103   : > { %s1017_s15 = smov %s854_s26  ;;  %s1018_s16 = smov %s755_s17 }
 0x104   : > { %s1019_s17 = smov %s1021_s20  ;;  %25 = sbr.rel (!%p23_p6) target bundleno = 12 (0xc), region = 105 }
 0x109   :  { %439 = vsyncpa [#allocation6], 1 }
 0x10a   :  { %441 = vsyncpa [#allocation6 + $0x1], 1 }
 0x10b   :  { %442 = vsyncpa [#allocation7], 1 }
 0x10c   :  { %444 = vsyncpa [#allocation7 + $0x1], 1 }

</bundles_post_ra>
